<compile_context>
chip_gen: v7x
topology: tpu7x:2x2x1
jax: 0.10.0
libtpu: 0.0.40
codegen_flags: <defaults>
</compile_context>

<pallas_src>
import functools

import jax
import jax.numpy as jnp
from jax import lax
from jax.experimental import pallas as pl
from jax.experimental.pallas import tpu as pltpu


# ---------------------------------------------------------------------------
# Kernels
# ---------------------------------------------------------------------------
def _approx_gelu_fused_kernel(x_ref, w_ref, b_ref, o_ref):
    """Single-shot tile (full-K panel, nk == 1): no accumulator scratch."""
    # x @ W^T with the weight kept in native PyTorch (dim_out, dim_in) layout;
    # contraction is on both minor dims.
    # TODO(synk): if a bundle dump shows a per-tile vxpose for this layout,
    # pre-transpose the weight once outside the hot path instead.
    y = lax.dot_general(
        x_ref[...], w_ref[...],
        dimension_numbers=(((1,), (1,)), ((), ())),
        preferred_element_type=jnp.float32,
    )
    y = y + b_ref[...].astype(jnp.float32)
    o_ref[...] = (y * jax.nn.sigmoid(1.702 * y)).astype(o_ref.dtype)


def _approx_gelu_acc_kernel(x_ref, w_ref, b_ref, o_ref, acc_ref):
    """K-tiled variant: f32 VMEM accumulator, K is the innermost grid axis."""
    k = pl.program_id(2)

    @pl.when(k == 0)
    def _():
        acc_ref[...] = jnp.zeros_like(acc_ref)

    acc_ref[...] += lax.dot_general(
        x_ref[...], w_ref[...],
        dimension_numbers=(((1,), (1,)), ((), ())),
        preferred_element_type=jnp.float32,
    )

    @pl.when(k == pl.num_programs(2) - 1)
    def _():
        y = acc_ref[...] + b_ref[...].astype(jnp.float32)
        o_ref[...] = (y * jax.nn.sigmoid(1.702 * y)).astype(o_ref.dtype)


# ---------------------------------------------------------------------------
# Tile planning
# ---------------------------------------------------------------------------
def _round_up(x, n):
    return -(-x // n) * n


@functools.lru_cache(maxsize=None)
def _vmem_budget_bytes():
    """Generation-aware VMEM budget (bytes) with headroom for Mosaic scratch."""
    cap = None
    try:
        info = pltpu.get_tpu_info()
        cap = getattr(info, "vmem_capacity_bytes", None)
    except Exception:
        cap = None
    if cap is None:
        try:
            kind = jax.devices()[0].device_kind.lower()
            # v7 parts have 64 MiB per TensorCore; earlier gens have 128 MiB.
            cap = 64 * 1024 * 1024 if "v7" in kind else 128 * 1024 * 1024
        except Exception:
            cap = 64 * 1024 * 1024          # always-safe fallback
    return min(int(cap * 0.75), 100 * 1024 * 1024)


def _tm_candidates(m, align):
    full = min(_round_up(m, align), 8192)
    cands = {full}
    for t in (4096, 2048, 1024, 512, 256, 128, 64, 32, 16, 8):
        if align <= t < full and t % align == 0:
            cands.add(t)
    return sorted(cands, reverse=True)


def _tn_candidates(dim_out):
    if dim_out % 128 != 0:
        # Full-extent N block (block dim == array dim is allowed): avoids any
        # pad / slice HBM passes for odd widths at the cost of a masked tail
        # store in the last vreg.
        return [dim_out]
    cands = []
    t = min(dim_out, 8192)
    while t >= 128:
        if dim_out % t == 0:
            cands.append(t)
        t -= 128
    return cands


def _tk_candidates(dim_in, max_block_k):
    cands = [dim_in]                        # full-K panel (preferred: nk == 1)
    t = (min(dim_in - 1, 8192) // 128) * 128
    while t >= 128:
        if dim_in % t == 0:                 # exact divisor keeps the reduction exact
            cands.append(t)
        t -= 128
    if max_block_k is not None:
        capped = [t for t in cands if t <= max_block_k]
        if capped:
            cands = capped
    return cands


def _select_plan(m, dim_in, dim_out, x_its, w_its, o_its, budget, max_block_k):
    m_align = 16 if min(x_its, o_its) < 4 else 8     # clean bf16 sublane packing
    act_bytes = _round_up(m, m_align) * dim_in * x_its
    w_bytes = dim_out * dim_in * w_its
    weight_major = w_bytes >= act_bytes    # which operand gets streamed once when nk == 1

    step_overhead = 512 * 1024             # ~0.35 us per grid step, as HBM-byte equivalent
    flops = 2 * m * dim_in * dim_out
    best = None
    for tk in _tk_candidates(dim_in, max_block_k):
        nk = pl.cdiv(dim_in, tk)
        for tn in _tn_candidates(dim_out):
            nj = pl.cdiv(dim_out, tn)
            for tm in _tm_candidates(m, m_align):
                ni = pl.cdiv(m, tm)
                vmem = (2 * tm * tk * x_its + 2 * tn * tk * w_its
                        + 2 * tm * tn * o_its + 2 * tn * 4)
                if nk > 1:
                    vmem += tm * tn * 4     # f32 accumulator scratch
                if vmem > budget:
                    continue
                a_stream = ni * tm * dim_in * x_its
                w_stream = nj * tn * dim_in * w_its
                if nk == 1:
                    traffic = (w_stream + nj * a_stream) if weight_major \
                        else (a_stream + ni * w_stream)
                else:
                    traffic = ni * w_stream + nj * a_stream
                out_bytes = ni * tm * dim_out * o_its
                cost = traffic + out_bytes + ni * nj * nk * step_overhead
                if ni * nj < 2 and flops > (1 << 30):
                    cost = int(cost * 1.25)  # keep both v7x TensorCores busy
                cand = (cost, tm, tn, tk, ni, nj, nk, traffic + out_bytes)
                if best is None or cand[0] < best[0]:
                    best = cand
    if best is None:
        # Minimal fallback; essentially unreachable for sane shapes.
        tm = min(_round_up(m, m_align), 128)
        tn = 128 if dim_out % 128 == 0 else dim_out
        tk = 128 if dim_in % 128 == 0 else dim_in
        ni, nj, nk = pl.cdiv(m, tm), pl.cdiv(dim_out, tn), pl.cdiv(dim_in, tk)
        best = (0, tm, tn, tk, ni, nj, nk,
                ni * tm * dim_in * x_its + nj * tn * dim_in * w_its
                + m * dim_out * o_its)
    _, tm, tn, tk, ni, nj, nk, streamed = best
    return tm, tn, tk, ni, nj, nk, streamed, weight_major


# ---------------------------------------------------------------------------
# Wrapper
# ---------------------------------------------------------------------------
@functools.partial(jax.jit, static_argnames=("max_block_k",))
def approximate_gelu(x, weight, bias, *, max_block_k=None):
    """ApproximateGELU forward: y = x @ W^T + b; out = y * sigmoid(1.702*y).

    x: (..., dim_in); weight: (dim_out, dim_in) [PyTorch layout]; bias: (dim_out,).
    Supply bf16 x *and* bf16 weight for the bf16 fast path (no hidden casts).
    """
    orig_shape = x.shape
    dim_in = orig_shape[-1]
    dim_out, dim_in_w = weight.shape
    assert dim_in_w == dim_in, "weight must be (dim_out, dim_in)"

    out_dtype = x.dtype
    if weight.dtype != x.dtype:
        # Correctness fallback only; for best HBM traffic pass matching dtypes.
        weight = weight.astype(x.dtype)

    x2d = x.reshape(-1, dim_in)
    m = x2d.shape[0]
    b2d = bias.astype(jnp.float32).reshape(1, dim_out)

    x_its = jnp.dtype(x.dtype).itemsize
    w_its = jnp.dtype(weight.dtype).itemsize
    o_its = jnp.dtype(out_dtype).itemsize

    budget = _vmem_budget_bytes()
    tm, tn, tk, ni, nj, nk, streamed, weight_major = _select_plan(
        m, dim_in, dim_out, x_its, w_its, o_its, budget, max_block_k)

    if nk == 1:
        kernel = _approx_gelu_fused_kernel
        scratch = []
        if weight_major:
            # Weight (the larger operand) is streamed exactly once: its block
            # index only changes on the outer grid axis.
            grid = (nj, ni)
            x_map = lambda j, i: (i, 0)
            w_map = lambda j, i: (j, 0)
            b_map = lambda j, i: (0, j)
            o_map = lambda j, i: (i, j)
        else:
            grid = (ni, nj)
            x_map = lambda i, j: (i, 0)
            w_map = lambda i, j: (j, 0)
            b_map = lambda i, j: (0, j)
            o_map = lambda i, j: (i, j)
        semantics = ("parallel", "parallel")
    else:
        # K-tiled reduction: K must stay innermost with "arbitrary" semantics
        # and the output block index constant across it (accumulator revisit).
        kernel = _approx_gelu_acc_kernel
        scratch = [pltpu.VMEM((tm, tn), jnp.float32)]
        grid = (ni, nj, nk)
        x_map = lambda i, j, k: (i, k)
        w_map = lambda i, j, k: (j, k)
        b_map = lambda i, j, k: (0, j)
        o_map = lambda i, j, k: (i, j)
        semantics = ("parallel", "parallel", "arbitrary")

    cost = pl.CostEstimate(
        flops=2 * m * dim_in * dim_out,
        transcendentals=m * dim_out,               # exp inside the sigmoid gate
        bytes_accessed=streamed + 2 * dim_out * 4,  # actual streamed bytes for this tiling
    )

    out = pl.pallas_call(
        kernel,
        out_shape=jax.ShapeDtypeStruct((m, dim_out), out_dtype),
        grid_spec=pltpu.PrefetchScalarGridSpec(
            num_scalar_prefetch=0,
            grid=grid,
            in_specs=[
                pl.BlockSpec((tm, tk), x_map),
                pl.BlockSpec((tn, tk), w_map),
                pl.BlockSpec((1, tn), b_map),
            ],
            out_specs=pl.BlockSpec((tm, tn), o_map),
            scratch_shapes=scratch,
        ),
        compiler_params=pltpu.CompilerParams(
            dimension_semantics=semantics,
            vmem_limit_bytes=budget,
        ),
        cost_estimate=cost,
    )(x2d, weight, b2d)

    return out.reshape(*orig_shape[:-1], dim_out)


# ---------------------------------------------------------------------------
# Demo / self-test
# ---------------------------------------------------------------------------
if __name__ == "__main__":
    key = jax.random.PRNGKey(0)
    kx, kw, kb, kx2, kw2, kb2 = jax.random.split(key, 6)

    # Small shapes consistent with the module: (batch=2, seq=8, dim_in=32) -> dim_out=32.
    batch, seq, dim_in, dim_out = 2, 8, 32, 32
    x = jax.random.normal(kx, (batch, seq, dim_in), dtype=jnp.float32)
    bound = 1.0 / (dim_in ** 0.5)
    weight = jax.random.uniform(kw, (dim_out, dim_in), minval=-bound, maxval=bound,
                                dtype=jnp.float32)
    bias = jax.random.uniform(kb, (dim_out,), minval=-bound, maxval=bound,
                              dtype=jnp.float32)

    y_ref = x @ weight.T + bias
    ref = y_ref * jax.nn.sigmoid(1.702 * y_ref)

    # f32 path (fused full-K kernel).
    out = jax.block_until_ready(approximate_gelu(x, weight, bias))
    assert out.shape == (batch, seq, dim_out)
    assert jnp.allclose(out, ref, atol=1e-4, rtol=1e-4), "f32 mismatch vs reference"

    # bf16 path: caller supplies bf16 activations AND bf16 weight (no hidden
    # wrapper-side f32->bf16 HBM pass); accumulation/gate stay f32 in-kernel.
    out_bf16 = jax.block_until_ready(
        approximate_gelu(x.astype(jnp.bfloat16), weight.astype(jnp.bfloat16), bias))
    assert out_bf16.shape == (batch, seq, dim_out)
    assert jnp.allclose(out_bf16.astype(jnp.float32), ref, atol=5e-2, rtol=5e-2), \
        "bf16 mismatch vs reference"

    # Lane-dense tiled-N path (dim_out multiple of 128), still small.
    b2, s2, di2, do2 = 2, 64, 256, 384
    x2 = jax.random.normal(kx2, (b2, s2, di2), dtype=jnp.float32)
    bound2 = 1.0 / (di2 ** 0.5)
    w2 = jax.random.uniform(kw2, (do2, di2), minval=-bound2, maxval=bound2,
                            dtype=jnp.float32)
    b2_ = jax.random.uniform(kb2, (do2,), minval=-bound2, maxval=bound2,
                             dtype=jnp.float32)
    y2 = x2 @ w2.T + b2_
    ref2 = y2 * jax.nn.sigmoid(1.702 * y2)

    out2 = jax.block_until_ready(approximate_gelu(x2, w2, b2_))
    assert out2.shape == (b2, s2, do2)
    assert jnp.allclose(out2, ref2, atol=2e-3, rtol=2e-3), "f32 tiled-N mismatch"

    # Force the K-tiled accumulator kernel (exercises the nk > 1 path).
    out3 = jax.block_until_ready(approximate_gelu(x2, w2, b2_, max_block_k=128))
    assert out3.shape == (b2, s2, do2)
    assert jnp.allclose(out3, ref2, atol=2e-3, rtol=2e-3), "K-tiled mismatch"

    print("KERNEL_OK")
</pallas_src>

<mosaic_0001>
module attributes {stable_mosaic.version = 11 : i64} {
  func.func @_approx_gelu_fused_kernel(%arg0: i32, %arg1: i32, %arg2: memref<16x32xf32, #tpu.memory_space<vmem>>, %arg3: memref<32x32xf32, #tpu.memory_space<vmem>>, %arg4: memref<1x32xf32, #tpu.memory_space<vmem>>, %arg5: memref<16x32xf32, #tpu.memory_space<vmem>>) attributes {dimension_semantics = [#tpu.dimension_semantics<parallel>, #tpu.dimension_semantics<parallel>], iteration_bounds = array<i64: 1, 1>, scalar_prefetch = 0 : i64, scratch_operands = 0 : i64, tpu.core_type = #tpu.core_type<tc>, window_params = [{transform_indices = @transform_0, window_bounds = array<i64: 16, 32>}, {transform_indices = @transform_1, window_bounds = array<i64: 32, 32>}, {transform_indices = @transform_2, window_bounds = array<i64: 1, 32>}, {transform_indices = @transform_3, window_bounds = array<i64: 16, 32>}]} {
    %c0 = arith.constant 0 : index
    %c0_0 = arith.constant 0 : index
    %0 = vector.load %arg2[%c0, %c0_0] : memref<16x32xf32, #tpu.memory_space<vmem>>, vector<16x32xf32>
    %c0_1 = arith.constant 0 : index
    %c0_2 = arith.constant 0 : index
    %1 = vector.load %arg3[%c0_1, %c0_2] : memref<32x32xf32, #tpu.memory_space<vmem>>, vector<32x32xf32>
    %cst = arith.constant dense<0.000000e+00> : vector<16x32xf32>
    %2 = tpu.matmul %0, %1, %cst {dimension_numbers = #tpu.dot_dimension_numbers<[1], [1], [0], [0], [0, 0, 1, 0], [], []>} : vector<16x32xf32>, vector<32x32xf32>, vector<16x32xf32> -> vector<16x32xf32>
    %c0_3 = arith.constant 0 : index
    %c0_4 = arith.constant 0 : index
    %3 = vector.load %arg4[%c0_3, %c0_4] : memref<1x32xf32, #tpu.memory_space<vmem>>, vector<1x32xf32>
    %4 = vector.broadcast %3 : vector<1x32xf32> to vector<16x32xf32>
    %5 = arith.addf %2, %4 : vector<16x32xf32>
    %cst_5 = arith.constant 1.702000e+00 : f32
    %6 = vector.broadcast %cst_5 : f32 to vector<16x32xf32>
    %7 = arith.mulf %6, %5 : vector<16x32xf32>
    %8 = arith.negf %7 : vector<16x32xf32>
    %9 = math.exp %8 : vector<16x32xf32>
    %cst_6 = arith.constant 1.000000e+00 : f32
    %10 = vector.broadcast %cst_6 : f32 to vector<16x32xf32>
    %11 = arith.addf %10, %9 : vector<16x32xf32>
    %12 = arith.divf %10, %11 : vector<16x32xf32>
    %13 = arith.mulf %5, %12 : vector<16x32xf32>
    %c0_7 = arith.constant 0 : index
    %c0_8 = arith.constant 0 : index
    %14 = vector.load %arg5[%c0_7, %c0_8] : memref<16x32xf32, #tpu.memory_space<vmem>>, vector<16x32xf32>
    tpu.vector_store %arg5[%c0_7, %c0_8], %13 {strides = array<i32>} : memref<16x32xf32, #tpu.memory_space<vmem>>, vector<16x32xf32>,
    return
  }
  func.func @transform_0(%arg0: i32, %arg1: i32) -> (i32, i32) {
    %c0_i32 = arith.constant 0 : i32
    %c0_i32_0 = arith.constant 0 : i32
    return %arg1, %c0_i32 : i32, i32
  }
  func.func @transform_1(%arg0: i32, %arg1: i32) -> (i32, i32) {
    %c0_i32 = arith.constant 0 : i32
    %c0_i32_0 = arith.constant 0 : i32
    return %arg0, %c0_i32 : i32, i32
  }
  func.func @transform_2(%arg0: i32, %arg1: i32) -> (i32, i32) {
    %c0_i32 = arith.constant 0 : i32
    %c0_i32_0 = arith.constant 0 : i32
    return %c0_i32, %arg0 : i32, i32
  }
  func.func @transform_3(%arg0: i32, %arg1: i32) -> (i32, i32) {
    %c0_i32 = arith.constant 0 : i32
    return %arg1, %arg0 : i32, i32
  }
}

</mosaic_0001>

<bundles_post_ra>
// kernel: approximate_gelu.1
= control target key start
LH: loop header
LB: loop body
LE: loop exit
PB: predicated region body
PF: predicated region fallthrough
CT: control target
= control target key end

     0   :  { %8 = vsyncpa [#allocation3], 0  ;;  %s439_s0 = inlined_call_operand.hbm [shape: f32[16,32], index: 0, kind: input, shape index: {}]   ;;  %s440_s1 = inlined_call_operand.hbm [shape: f32[32,32], index: 1, kind: input, shape index: {}]   ;;  %s441_s2 = inlined_call_operand.hbm [shape: f32[1,32], index: 2, kind: input, shape index: {}]   ;;  %s442_s3 = inlined_call_operand.hbm [shape: f32[16,32], index: 3, kind: output, shape index: {}]  }
   0x1   :  { %9 = vsyncpa [#allocation6], 0 }
   0x2   :  { %10 = vsyncpa [#allocation4], 0  ;;  %s343_s12 = smov [#allocation5]   ;;  %s344_s14 = smov [#allocation2]  }
   0x3   :  { %s28_s13 = sshll.u32 %s343_s12, 4  ;;  %s16_s15 = sshll.u32 %s344_s14, 4  ;;  %s29_s13 = int_to_ptr.vmem [resolvable:$true] %s28_s13  ;;  %s369_s15 = int_to_ptr.vmem [resolvable:$true] %s16_s15 }
   0x4   :  { %s249_s18 = scalar_lea.hbm %s440_s1, 512 }
   0x5   :  { %p250_p0 = scmp.ne.s32.totalorder %s440_s1, %s249_s18  ;;  %p253_p1 = scmp.lt.u32.totalorder %s249_s18, %s440_s1 }
   0x7   :  { %p255_p2 = pnand %p253_p1, %p250_p0 }
   0x9   :  { %258 = shalt.err (!%p255_p2)
}
   0xa   :  { %s259_s23 = scalar_lea.vmem %s29_s13, 512  ;;  %p264_p4 = scmp.lt.s32.totalorder %s29_s13, %s29_s13 }
   0xb   :  { %p260_p3 = scmp.ne.s32.totalorder %s29_s13, %s259_s23  ;;  %p265_p5 = scmp.lt.s32.totalorder %s259_s23, %s259_s23 }
   0xd   :  { %p266_p6 = por %p265_p5, %p264_p4 }
   0xf   :  { %p267_p7 = pnand %p266_p6, %p260_p3 }
  0x11   :  { %270 = shalt.err (!%p267_p7)
}
  0x12   :  { %s345_s24 = smov 128   ;;  %s346_s25 = smov 8  }
  0x13   :  { %34 = dma.hbm_to_vmem [thread:$0]  %s440_s1, 512, %s29_s13, [#allocation6], %s345_s24, %s345_s24, %s346_s25  }
  0x14   :  { %s271_s30 = scalar_lea.hbm %s439_s0, 256 }
  0x15   :  { %p272_p8 = scmp.ne.s32.totalorder %s439_s0, %s271_s30  ;;  %p275_p9 = scmp.lt.u32.totalorder %s271_s30, %s439_s0 }
  0x17   :  { %p277_p10 = pnand %p275_p9, %p272_p8 }
  0x19   :  { %280 = shalt.err (!%p277_p10)
}
  0x1a   :  { %s281_s8 = scalar_lea.vmem %s369_s15, 256  ;;  %p286_p12 = scmp.lt.s32.totalorder %s369_s15, %s369_s15 }
  0x1b   :  { %p282_p11 = scmp.ne.s32.totalorder %s369_s15, %s281_s8  ;;  %p287_p13 = scmp.lt.s32.totalorder %s281_s8, %s281_s8 }
  0x1d   :  { %p288_p0 = por %p287_p13, %p286_p12 }
  0x1f   :  { %p289_p1 = pnand %p288_p0, %p282_p11 }
  0x21   :  { %292 = shalt.err (!%p289_p1)
}
  0x22   :  { %22 = dma.hbm_to_vmem [thread:$0]  %s439_s0, 256, %s369_s15, [#allocation3], %s345_s24, %s345_s24, %s346_s25  }
  0x23   :  { %s347_s10 = smov [#allocation7]   ;;  %s293_s14 = scalar_lea.hbm %s441_s2, 16 }
  0x24   :  { %s41_s11 = sshll.u32 %s347_s10, 4  ;;  %p294_p2 = scmp.ne.s32.totalorder %s441_s2, %s293_s14  ;;  %s42_s11 = int_to_ptr.vmem [resolvable:$true] %s41_s11 }
  0x25   :  { %p297_p3 = scmp.lt.u32.totalorder %s293_s14, %s441_s2 }
  0x27   :  { %p299_p4 = pnand %p297_p3, %p294_p2 }
  0x29   :  { %302 = shalt.err (!%p299_p4)
}
  0x2a   :  { %s303_s20 = scalar_lea.vmem %s42_s11, 16  ;;  %s307_s0 = scalar_lea.vmem %s42_s11, 32 }
  0x2b   :  { %p304_p5 = scmp.ne.s32.totalorder %s42_s11, %s303_s20  ;;  %p308_p6 = scmp.lt.s32.totalorder %s42_s11, %s42_s11 }
  0x2c   :  { %p309_p7 = scmp.lt.s32.totalorder %s307_s0, %s303_s20 }
  0x2e   :  { %p310_p8 = por %p309_p7, %p308_p6 }
  0x30   :  { %p311_p9 = pnand %p310_p8, %p304_p5 }
  0x32   :  { %314 = shalt.err (!%p311_p9)
}
  0x33   :  { %44 = dma.hbm_to_vmem [thread:$0]  %s441_s2, 16, %s42_s11, [#allocation6]  }
  0x34   :  { %337 = dma.done.wait [#allocation3], 256  }
  0x35   :  { %338 = vsyncadd [#allocation3], 4294967040 }
  0x36   :  { %339 = dma.done.wait [#allocation6], 528  }
  0x37   :  { %340 = vsyncadd [#allocation6], 4294966768  ;;  %vm67_vm0 = vcmask 261120   ;;  %v56_v0 = vld [vmem:[#allocation5] sm:$0xff]  ;;  %v57_v1 = vld [vmem:[#allocation5 + $0x8] sm:$0xff]  ;;  %s348_s2 = smov [#allocation8]  }
  0x38   :  { %vm224_vm1 = vmpackc.low %vm67_vm0, %vm67_vm0  ;;  %v58_v2 = vld [vmem:[#allocation5 + $0x10] sm:$0xff]  ;;  %v223_v3 = vpack.c.bf16 %v57_v1, %v56_v0  ;;  %v59_v4 = vld [vmem:[#allocation5 + $0x18] sm:$0xff]  ;;  %s184_s22 = sshll.u32 %s348_s2, 4  ;;  %s185_s22 = int_to_ptr.vmem [resolvable:$true] %s184_s22 }
  0x39   :  { %v54_v5 = vld [vmem:[#allocation2] sm:$0xff]  ;;  %v229_v6 = vpack.c.bf16 %v59_v4, %v58_v2  ;;  %v55_v7 = vld [vmem:[#allocation2 + $0x8] sm:$0xff]  ;;  %v197_v8 = vld [vmem:[#allocation7] ss:$0 sm:$0xff]  ;;  %s315_s23 = scalar_lea.vmem %s185_s22, 256  ;;  %p320_p11 = scmp.lt.s32.totalorder %s185_s22, %s185_s22 }
  0x3a   :  { %220 = vmatprep.mubr.msk.f32.mxu0 %vm67_vm0, %v54_v5  ;;  %225 = vmatprep.subr.msk.bf16.mxu0 %vm224_vm1, %v223_v3  ;;  %p316_p10 = scmp.ne.s32.totalorder %s185_s22, %s315_s23  ;;  %p321_p12 = scmp.lt.s32.totalorder %s315_s23, %s315_s23 }
  0x3b   :  { %228 = vmatpush3.bf16.xpose.msk.msra.mxu0 %vm224_vm1, %v223_v3 }
  0x3c   :  { %231 = vmatprep.subr.msk.bf16.mxu0 %vm224_vm1, %v229_v6  ;;  %p322_p13 = por %p321_p12, %p320_p11 }
  0x3e   :  { %p323_p0 = pnand %p322_p13, %p316_p10 }
  0x43   :  { %234 = vmatpush3.bf16.xpose.msk.msra.mxu0 %vm224_vm1, %v229_v6 }
  0x4a   :  { %221 = vmatmul.mubr.msk.f32.vlgmr.msra.gmra.mrb[0].mxu0 %vm67_vm0, %v55_v7 }
 0x11d   :  { %v222_v9 = vpop.f32.mrb[0].mxu0 }
 0x11e   :  { %v158_v10 = vadd.f32 %v222_v9, %v197_v8  ;;  %v152_v11 = vpop.f32.mrb[1].mxu0 }
 0x11f   :  { %v153_v12 = vadd.f32 %v197_v8, %v152_v11 }
 0x120   :  { %v205_v13 = vmul.f32 -1.702, %v158_v10 }
 0x121   :  { %v204_v14 = vmul.f32 -1.702, %v153_v12 }
 0x122   :  { %v167_v15 = vmul.f32 1.442695, %v205_v13 }
 0x123   :  { %v165_v16 = vmul.f32 1.442695, %v204_v14 }
 0x124   :  { %241 = vpow2.f32 %v167_v15 }
 0x125   :  { %243 = vpow2.f32 %v165_v16 }
 0x12e   :  { %v242_v17 = vpop.eup %241 }
 0x12f   :  { %v244_v18 = vpop.eup %243  ;;  %v170_v19 = vadd.f32 1.0, %v242_v17 }
 0x130   :  { %v169_v20 = vadd.f32 1.0, %v244_v18 }
 0x131   :  { %245 = vrcp.f32 %v170_v19 }
 0x132   :  { %247 = vrcp.f32 %v169_v20 }
 0x13b   :  { %v246_v21 = vpop.eup %245 }
 0x13c   :  { %v248_v22 = vpop.eup %247  ;;  %v176_v23 = vmul.f32 %v246_v21, %v158_v10 }
 0x13d   :  { %v175_v24 = vmul.f32 %v248_v22, %v153_v12 }
 0x13e   :  { %178 = vst.msk [vmem:[#allocation8 + $0x8] sm:$0xff] %vm67_vm0, %v176_v23 }
 0x13f   :  { %177 = vst.msk [vmem:[#allocation8] sm:$0xff] %vm67_vm0, %v175_v24 }
 0x140   :  { %326 = shalt.err (!%p323_p0)
}
 0x141   :  { %s327_s28 = scalar_lea.hbm %s442_s3, 256 }
 0x142   :  { %p328_p1 = scmp.ne.s32.totalorder %s442_s3, %s327_s28  ;;  %p331_p2 = scmp.lt.u32.totalorder %s327_s28, %s442_s3 }
 0x144   :  { %p333_p3 = pnand %p331_p2, %p328_p1 }
 0x146   :  { %336 = shalt.err (!%p333_p3)
}
 0x147   :  { %190 = dma.vmem_to_hbm [thread:$0]  %s185_s22, 256, %s442_s3, [#allocation4], %s345_s24, %s345_s24, %s346_s25  }
 0x148   :  { %341 = dma.done.wait [#allocation4], 256  }
 0x149   :  { %342 = vsyncadd [#allocation4], 4294967040 }
 0x14a   :  { %194 = vsyncpa [#allocation3], 1 }
 0x14b   :  { %195 = vsyncpa [#allocation6], 1 }
 0x14c   :  { %196 = vsyncpa [#allocation4], 1 }

</bundles_post_ra>
